<compile_context>
chip_gen: v5e
topology: v5e:2x2
jax: 0.10.0
libtpu: 0.0.40
codegen_flags: <defaults>
</compile_context>

<pallas_src>
import functools

import jax
import jax.numpy as jnp
from jax.experimental import pallas as pl
from jax.experimental.pallas import tpu as pltpu


def _round_up(n, m):
    return ((n + m - 1) // m) * m


def _generator_kernel(x_ref,
                      w1_ref, b1_ref,
                      w2_ref, b2_ref,
                      w3_ref, b3_ref,
                      w4_ref, b4_ref,
                      o_ref):
    # Cast the f32 input tile to bf16 in-kernel (hidden under the layer-1
    # matmul); all matmuls are bf16 operands with f32 accumulation.
    h = x_ref[...].astype(jnp.bfloat16)
    # Layer 1: Linear + ReLU
    h = jnp.dot(h, w1_ref[...],
                preferred_element_type=jnp.float32) + b1_ref[...]
    h = jnp.maximum(h, 0.0).astype(jnp.bfloat16)
    # Layer 2: Linear + ReLU
    h = jnp.dot(h, w2_ref[...],
                preferred_element_type=jnp.float32) + b2_ref[...]
    h = jnp.maximum(h, 0.0).astype(jnp.bfloat16)
    # Layer 3: Linear + ReLU
    h = jnp.dot(h, w3_ref[...],
                preferred_element_type=jnp.float32) + b3_ref[...]
    h = jnp.maximum(h, 0.0).astype(jnp.bfloat16)
    # Layer 4: Linear + Tanh
    h = jnp.dot(h, w4_ref[...],
                preferred_element_type=jnp.float32) + b4_ref[...]
    o_ref[...] = jnp.tanh(h).astype(o_ref.dtype)


def _pick_bm(B, block_batch):
    """Batch tile: full batch if it fits, else an even step count of tiles."""
    if B <= block_batch:
        return B
    # Even number of steps keeps both v7x TensorCores balanced; on single-TC
    # chips it simply means few, large steps.
    steps = 2 * pl.cdiv(B, 2 * block_batch)
    bm = -(-B // steps)          # ceil(B / steps)
    return _round_up(bm, 8)      # sublane-aligned tile height


def generator_forward(x, prepared, *, block_batch=512, out_dtype=jnp.float32):
    """Run the fused Generator MLP.

    x: [B, noise_dim] float32
    prepared: dict from `prepare_generator_params` —
        w1..w4: [in, out] bfloat16, b1..b4: [1, out] float32.
    Returns [B, img_dim] in `out_dtype`.
    """
    (w1, b1, w2, b2, w3, b3, w4, b4) = (
        prepared["w1"], prepared["b1"], prepared["w2"], prepared["b2"],
        prepared["w3"], prepared["b3"], prepared["w4"], prepared["b4"],
    )
    B, noise_dim = x.shape
    img_dim = w4.shape[1]

    bm = _pick_bm(B, block_batch)
    grid = (pl.cdiv(B, bm),)

    def const_spec(arr):
        # Whole array resident in VMEM, same block every grid step,
        # single-buffered (it is only DMA'd once).
        return pl.BlockSpec(arr.shape, lambda i: (0, 0),
                            pipeline_mode=pl.Buffered(1))

    out = pl.pallas_call(
        _generator_kernel,
        out_shape=jax.ShapeDtypeStruct((B, img_dim), out_dtype),
        grid_spec=pltpu.PrefetchScalarGridSpec(
            num_scalar_prefetch=0,
            grid=grid,
            in_specs=[
                pl.BlockSpec((bm, noise_dim), lambda i: (i, 0)),
                const_spec(w1), const_spec(b1),
                const_spec(w2), const_spec(b2),
                const_spec(w3), const_spec(b3),
                const_spec(w4), const_spec(b4),
            ],
            out_specs=pl.BlockSpec((bm, img_dim), lambda i: (i, 0)),
        ),
        compiler_params=pltpu.CompilerParams(
            dimension_semantics=("parallel",),
            # Resident bf16 weights ~0.4 MiB + bm*512 f32 widest intermediate
            # + small double-buffered I/O tiles — far under the limit on all
            # of v5e/v6e/v7x.
            vmem_limit_bytes=32 * 1024 * 1024,
        ),
    )(x, w1, b1, w2, b2, w3, b3, w4, b4)

    return out


def init_generator_params(key, noise_dim, img_dim):
    """Deterministic init matching the PyTorch layer shapes (f32 master copy).

    PyTorch nn.Linear default: U(-1/sqrt(fan_in), 1/sqrt(fan_in)).
    Weights stored as [in, out] (transposed relative to PyTorch's [out, in]).
    """
    dims = [noise_dim, 128, 256, 512, img_dim]
    params = {}
    for idx in range(4):
        fan_in, fan_out = dims[idx], dims[idx + 1]
        key, kw, kb = jax.random.split(key, 3)
        bound = 1.0 / jnp.sqrt(jnp.float32(fan_in))
        params[f"w{idx + 1}"] = jax.random.uniform(
            kw, (fan_in, fan_out), jnp.float32, -bound, bound)
        params[f"b{idx + 1}"] = jax.random.uniform(
            kb, (1, fan_out), jnp.float32, -bound, bound)
    return params


def prepare_generator_params(params):
    """One-time preparation of kernel-ready params (bf16 matmul operands).

    Called once (or whenever the f32 master weights change), NOT per forward.
    """
    prepared = {}
    for i in range(1, 5):
        prepared[f"w{i}"] = params[f"w{i}"].astype(jnp.bfloat16)
        prepared[f"b{i}"] = params[f"b{i}"]  # bias stays f32 (f32 epilogue)
    return prepared


def _reference_forward(x, params):
    """Plain-JAX reference with the same bf16-operand / f32-accum scheme."""
    h = x.astype(jnp.bfloat16)
    for i in range(1, 5):
        w = params[f"w{i}"].astype(jnp.bfloat16)
        y = jnp.dot(h, w, preferred_element_type=jnp.float32) + params[f"b{i}"]
        if i < 4:
            h = jnp.maximum(y, 0.0).astype(jnp.bfloat16)
        else:
            return jnp.tanh(y)


if __name__ == "__main__":
    noise_dim = 32
    img_dim = 64
    batch = 64

    key = jax.random.PRNGKey(0)
    key, kx = jax.random.split(key)
    x = jax.random.normal(kx, (batch, noise_dim), jnp.float32)

    params = init_generator_params(key, noise_dim, img_dim)
    prepared = prepare_generator_params(params)   # hoisted out of forward

    fwd = jax.jit(functools.partial(generator_forward, block_batch=512))
    out = fwd(x, prepared)
    out = jax.block_until_ready(out)

    # sanity check vs. plain-JAX reference (bf16 matmul tolerance)
    ref = _reference_forward(x, params)
    assert out.shape == (batch, img_dim)
    assert jnp.allclose(out, ref, atol=2e-2, rtol=2e-2), "mismatch vs reference"

    print("KERNEL_OK")
</pallas_src>

<mosaic_0001>
module attributes {stable_mosaic.version = 11 : i64} {
  func.func @_generator_kernel(%arg0: i32, %arg1: memref<64x32xf32, #tpu.memory_space<vmem>>, %arg2: memref<32x128xbf16, #tpu.memory_space<vmem>>, %arg3: memref<1x128xf32, #tpu.memory_space<vmem>>, %arg4: memref<128x256xbf16, #tpu.memory_space<vmem>>, %arg5: memref<1x256xf32, #tpu.memory_space<vmem>>, %arg6: memref<256x512xbf16, #tpu.memory_space<vmem>>, %arg7: memref<1x512xf32, #tpu.memory_space<vmem>>, %arg8: memref<512x64xbf16, #tpu.memory_space<vmem>>, %arg9: memref<1x64xf32, #tpu.memory_space<vmem>>, %arg10: memref<64x64xf32, #tpu.memory_space<vmem>>) attributes {dimension_semantics = [#tpu.dimension_semantics<parallel>], iteration_bounds = array<i64: 1>, scalar_prefetch = 0 : i64, scratch_operands = 0 : i64, tpu.core_type = #tpu.core_type<tc>, window_params = [{transform_indices = @transform_0, window_bounds = array<i64: 64, 32>}, {pipeline_mode = #tpu.pipeline_mode<synchronous>, transform_indices = @transform_1, window_bounds = array<i64: 32, 128>}, {pipeline_mode = #tpu.pipeline_mode<synchronous>, transform_indices = @transform_2, window_bounds = array<i64: 1, 128>}, {pipeline_mode = #tpu.pipeline_mode<synchronous>, transform_indices = @transform_3, window_bounds = array<i64: 128, 256>}, {pipeline_mode = #tpu.pipeline_mode<synchronous>, transform_indices = @transform_4, window_bounds = array<i64: 1, 256>}, {pipeline_mode = #tpu.pipeline_mode<synchronous>, transform_indices = @transform_5, window_bounds = array<i64: 256, 512>}, {pipeline_mode = #tpu.pipeline_mode<synchronous>, transform_indices = @transform_6, window_bounds = array<i64: 1, 512>}, {pipeline_mode = #tpu.pipeline_mode<synchronous>, transform_indices = @transform_7, window_bounds = array<i64: 512, 64>}, {pipeline_mode = #tpu.pipeline_mode<synchronous>, transform_indices = @transform_8, window_bounds = array<i64: 1, 64>}, {transform_indices = @transform_9, window_bounds = array<i64: 64, 64>}]} {
    %c0 = arith.constant 0 : index
    %c0_0 = arith.constant 0 : index
    %0 = vector.load %arg1[%c0, %c0_0] : memref<64x32xf32, #tpu.memory_space<vmem>>, vector<64x32xf32>
    %1 = arith.truncf %0 : vector<64x32xf32> to vector<64x32xbf16>
    %c0_1 = arith.constant 0 : index
    %c0_2 = arith.constant 0 : index
    %2 = vector.load %arg2[%c0_1, %c0_2] : memref<32x128xbf16, #tpu.memory_space<vmem>>, vector<32x128xbf16>
    %cst = arith.constant dense<0.000000e+00> : vector<64x128xf32>
    %3 = tpu.matmul %1, %2, %cst {dimension_numbers = #tpu.dot_dimension_numbers<[1], [0], [0], [1], [0, 0, 1, 1], [], []>} : vector<64x32xbf16>, vector<32x128xbf16>, vector<64x128xf32> -> vector<64x128xf32>
    %c0_3 = arith.constant 0 : index
    %c0_4 = arith.constant 0 : index
    %4 = vector.load %arg3[%c0_3, %c0_4] : memref<1x128xf32, #tpu.memory_space<vmem>>, vector<1x128xf32>
    %5 = vector.broadcast %4 : vector<1x128xf32> to vector<64x128xf32>
    %6 = arith.addf %3, %5 : vector<64x128xf32>
    %cst_5 = arith.constant 0.000000e+00 : f32
    %7 = vector.broadcast %cst_5 : f32 to vector<64x128xf32>
    %8 = arith.maximumf %6, %7 : vector<64x128xf32>
    %9 = arith.truncf %8 : vector<64x128xf32> to vector<64x128xbf16>
    %c0_6 = arith.constant 0 : index
    %c0_7 = arith.constant 0 : index
    %10 = vector.load %arg4[%c0_6, %c0_7] : memref<128x256xbf16, #tpu.memory_space<vmem>>, vector<128x256xbf16>
    %cst_8 = arith.constant dense<0.000000e+00> : vector<64x256xf32>
    %11 = tpu.matmul %9, %10, %cst_8 {dimension_numbers = #tpu.dot_dimension_numbers<[1], [0], [0], [1], [0, 0, 1, 1], [], []>} : vector<64x128xbf16>, vector<128x256xbf16>, vector<64x256xf32> -> vector<64x256xf32>
    %c0_9 = arith.constant 0 : index
    %c0_10 = arith.constant 0 : index
    %12 = vector.load %arg5[%c0_9, %c0_10] : memref<1x256xf32, #tpu.memory_space<vmem>>, vector<1x256xf32>
    %13 = vector.broadcast %12 : vector<1x256xf32> to vector<64x256xf32>
    %14 = arith.addf %11, %13 : vector<64x256xf32>
    %cst_11 = arith.constant 0.000000e+00 : f32
    %15 = vector.broadcast %cst_11 : f32 to vector<64x256xf32>
    %16 = arith.maximumf %14, %15 : vector<64x256xf32>
    %17 = arith.truncf %16 : vector<64x256xf32> to vector<64x256xbf16>
    %c0_12 = arith.constant 0 : index
    %c0_13 = arith.constant 0 : index
    %18 = vector.load %arg6[%c0_12, %c0_13] : memref<256x512xbf16, #tpu.memory_space<vmem>>, vector<256x512xbf16>
    %cst_14 = arith.constant dense<0.000000e+00> : vector<64x512xf32>
    %19 = tpu.matmul %17, %18, %cst_14 {dimension_numbers = #tpu.dot_dimension_numbers<[1], [0], [0], [1], [0, 0, 1, 1], [], []>} : vector<64x256xbf16>, vector<256x512xbf16>, vector<64x512xf32> -> vector<64x512xf32>
    %c0_15 = arith.constant 0 : index
    %c0_16 = arith.constant 0 : index
    %20 = vector.load %arg7[%c0_15, %c0_16] : memref<1x512xf32, #tpu.memory_space<vmem>>, vector<1x512xf32>
    %21 = vector.broadcast %20 : vector<1x512xf32> to vector<64x512xf32>
    %22 = arith.addf %19, %21 : vector<64x512xf32>
    %cst_17 = arith.constant 0.000000e+00 : f32
    %23 = vector.broadcast %cst_17 : f32 to vector<64x512xf32>
    %24 = arith.maximumf %22, %23 : vector<64x512xf32>
    %25 = arith.truncf %24 : vector<64x512xf32> to vector<64x512xbf16>
    %c0_18 = arith.constant 0 : index
    %c0_19 = arith.constant 0 : index
    %26 = vector.load %arg8[%c0_18, %c0_19] : memref<512x64xbf16, #tpu.memory_space<vmem>>, vector<512x64xbf16>
    %cst_20 = arith.constant dense<0.000000e+00> : vector<64x64xf32>
    %27 = tpu.matmul %25, %26, %cst_20 {dimension_numbers = #tpu.dot_dimension_numbers<[1], [0], [0], [1], [0, 0, 1, 1], [], []>} : vector<64x512xbf16>, vector<512x64xbf16>, vector<64x64xf32> -> vector<64x64xf32>
    %c0_21 = arith.constant 0 : index
    %c0_22 = arith.constant 0 : index
    %28 = vector.load %arg9[%c0_21, %c0_22] : memref<1x64xf32, #tpu.memory_space<vmem>>, vector<1x64xf32>
    %29 = vector.broadcast %28 : vector<1x64xf32> to vector<64x64xf32>
    %30 = arith.addf %27, %29 : vector<64x64xf32>
    %31 = math.tanh %30 : vector<64x64xf32>
    %c0_23 = arith.constant 0 : index
    %c0_24 = arith.constant 0 : index
    %32 = vector.load %arg10[%c0_23, %c0_24] : memref<64x64xf32, #tpu.memory_space<vmem>>, vector<64x64xf32>
    tpu.vector_store %arg10[%c0_23, %c0_24], %31 {strides = array<i32>} : memref<64x64xf32, #tpu.memory_space<vmem>>, vector<64x64xf32>,
    return
  }
  func.func @transform_0(%arg0: i32) -> (i32, i32) {
    %c0_i32 = arith.constant 0 : i32
    %c0_i32_0 = arith.constant 0 : i32
    return %arg0, %c0_i32 : i32, i32
  }
  func.func @transform_1(%arg0: i32) -> (i32, i32) {
    %c0_i32 = arith.constant 0 : i32
    %c0_i32_0 = arith.constant 0 : i32
    %c0_i32_1 = arith.constant 0 : i32
    return %c0_i32, %c0_i32_0 : i32, i32
  }
  func.func @transform_2(%arg0: i32) -> (i32, i32) {
    %c0_i32 = arith.constant 0 : i32
    %c0_i32_0 = arith.constant 0 : i32
    %c0_i32_1 = arith.constant 0 : i32
    return %c0_i32, %c0_i32_0 : i32, i32
  }
  func.func @transform_3(%arg0: i32) -> (i32, i32) {
    %c0_i32 = arith.constant 0 : i32
    %c0_i32_0 = arith.constant 0 : i32
    %c0_i32_1 = arith.constant 0 : i32
    return %c0_i32, %c0_i32_0 : i32, i32
  }
  func.func @transform_4(%arg0: i32) -> (i32, i32) {
    %c0_i32 = arith.constant 0 : i32
    %c0_i32_0 = arith.constant 0 : i32
    %c0_i32_1 = arith.constant 0 : i32
    return %c0_i32, %c0_i32_0 : i32, i32
  }
  func.func @transform_5(%arg0: i32) -> (i32, i32) {
    %c0_i32 = arith.constant 0 : i32
    %c0_i32_0 = arith.constant 0 : i32
    %c0_i32_1 = arith.constant 0 : i32
    return %c0_i32, %c0_i32_0 : i32, i32
  }
  func.func @transform_6(%arg0: i32) -> (i32, i32) {
    %c0_i32 = arith.constant 0 : i32
    %c0_i32_0 = arith.constant 0 : i32
    %c0_i32_1 = arith.constant 0 : i32
    return %c0_i32, %c0_i32_0 : i32, i32
  }
  func.func @transform_7(%arg0: i32) -> (i32, i32) {
    %c0_i32 = arith.constant 0 : i32
    %c0_i32_0 = arith.constant 0 : i32
    %c0_i32_1 = arith.constant 0 : i32
    return %c0_i32, %c0_i32_0 : i32, i32
  }
  func.func @transform_8(%arg0: i32) -> (i32, i32) {
    %c0_i32 = arith.constant 0 : i32
    %c0_i32_0 = arith.constant 0 : i32
    %c0_i32_1 = arith.constant 0 : i32
    return %c0_i32, %c0_i32_0 : i32, i32
  }
  func.func @transform_9(%arg0: i32) -> (i32, i32) {
    %c0_i32 = arith.constant 0 : i32
    %c0_i32_0 = arith.constant 0 : i32
    return %arg0, %c0_i32 : i32, i32
  }
}

</mosaic_0001>

<bundles_post_ra>
// kernel: generator_forward.1
= control target key start
LH: loop header
LB: loop body
LE: loop exit
PB: predicated region body
PF: predicated region fallthrough
CT: control target
= control target key end

     0   :  { %14 = vsyncpa [#allocation3], 0  ;;  %s2515_s0 = inlined_call_operand.vmem [shape: f32[64,32], index: 0, kind: input, shape index: {}]   ;;  %s2516_s1 = inlined_call_operand.vmem [shape: bf16[32,128], index: 1, kind: input, shape index: {}]   ;;  %s2517_s2 = inlined_call_operand.vmem [shape: f32[1,128], index: 2, kind: input, shape index: {}]   ;;  %s2518_s3 = inlined_call_operand.vmem [shape: bf16[128,256], index: 3, kind: input, shape index: {}]   ;;  %s2519_s4 = inlined_call_operand.vmem [shape: f32[1,256], index: 4, kind: input, shape index: {}]   ;;  %s2520_s5 = inlined_call_operand.hbm [shape: bf16[256,512], index: 5, kind: input, shape index: {}]   ;;  %s2521_s6 = inlined_call_operand.vmem [shape: f32[1,512], index: 6, kind: input, shape index: {}]   ;;  %s2522_s7 = inlined_call_operand.vmem [shape: bf16[512,64], index: 7, kind: input, shape index: {}]   ;;  %s2523_s8 = inlined_call_operand.vmem [shape: f32[1,64], index: 8, kind: input, shape index: {}]   ;;  %s2524_s9 = inlined_call_operand.hbm [shape: f32[64,64], index: 9, kind: output, shape index: {}]  }
   0x1   :  { %15 = vsyncpa [#allocation4], 0  ;;  %s30_s11 = sshll.u32 %s2520_s5, 4  ;;  %s2072_s12 = smov [#allocation2]   ;;  %s31_s11 = int_to_ptr.hbm [resolvable:$true] %s30_s11 }
   0x2   :  { %s32_s13 = sshll.u32 %s2072_s12, 4  ;;  %s2073_s14 = smov 256   ;;  %s33_s13 = int_to_ptr.vmem [resolvable:$true] %s32_s13 }
   0x3   :  { %s2074_s15 = smov 16  }
   0x4   :  { %38 = dma.hbm_to_vmem [thread:$0]  %s31_s11, 8192, %s33_s13, [#allocation3], %s2073_s14, %s2073_s14, %s2074_s15  }
   0x5   :  { %2068 = dma.done.wait [#allocation3], 8192  }
   0x6   :  { %2069 = vsyncadd [#allocation3], 4294959104  ;;  %v1867_v0 = vld [vmem:[%s2516_s1 + $0x8] sm:$0xff]  ;;  %v1866_v1 = vld [vmem:[%s2516_s1] sm:$0xff]  ;;  %vm82_vm0 = vcmask 261120   ;;  %vm1378_vm1 = vcmask 523264  }
   0x7   :  { %101 = vmatpush.bf16.msra.mxu0 %v1867_v0  ;;  %v50_v2 = vld [vmem:[%s2515_s0] sm:$0xff]  ;;  %v51_v3 = vld [vmem:[%s2515_s0 + $0x8] sm:$0xff]  ;;  %v52_v5 = vld [vmem:[%s2515_s0 + $0x10] sm:$0xff]  ;;  %s1393_s5 = sshll.u32 %s2524_s9, 4  ;;  %s2076_s21 = smov 128   ;;  %s1394_s5 = int_to_ptr.hbm [resolvable:$true] %s1393_s5 }
   0x8   :  { %v58_v4 = vpack.c.bf16 %v51_v3, %v50_v2  ;;  %v53_v6 = vld [vmem:[%s2515_s0 + $0x18] sm:$0xff]  ;;  %v1476_v8 = vld [vmem:[%s2518_s3 + $0x70] sm:$0xf]  ;;  %v1882_v10 = vld [vmem:[%s2518_s3 + $0x74] sm:$0xf]  ;;  %s2077_s22 = smov 8  }
   0x9   :  { %v59_v7 = vpack.c.bf16 %v53_v6, %v52_v5  ;;  %v1883_v9 = vld [vmem:[%s2518_s3 + $0x74] sm:$0xf0]  ;;  %v1478_v12 = vld [vmem:[%s2518_s3 + $0x78] sm:$0xf0]  ;;  %v1468_v13 = vld [vmem:[%s2518_s3 + $0x60] sm:$0xf] }
   0xa   :  { %v1477_v11 = vor.u32 %v1883_v9, %v1476_v8  ;;  %v1881_v14 = vld [vmem:[%s2518_s3 + $0x64] sm:$0xf0]  ;;  %v1481_v15 = vor.u32 %v1882_v10, %v1478_v12  ;;  %v1880_v16 = vld [vmem:[%s2518_s3 + $0x64] sm:$0xf]  ;;  %v1470_v17 = vld [vmem:[%s2518_s3 + $0x68] sm:$0xf0] }
   0xb   :  { %102 = vmatpush.bf16.msra.mxu0 %v1866_v1  ;;  %v1469_v18 = vor.u32 %v1881_v14, %v1468_v13  ;;  %v1473_v19 = vor.u32 %v1880_v16, %v1470_v17  ;;  %v1460_v20 = vld [vmem:[%s2518_s3 + $0x50] sm:$0xf]  ;;  %v1879_v21 = vld [vmem:[%s2518_s3 + $0x54] sm:$0xf0]  ;;  %v1878_v22 = vld [vmem:[%s2518_s3 + $0x54] sm:$0xf] }
   0xc   :  { %238 = vmatpush.bf16.msra.mxu1 %v1477_v11  ;;  %1980 = vmatpush.bf16.msra.mxu3 %v1477_v11  ;;  %v1462_v23 = vld [vmem:[%s2518_s3 + $0x58] sm:$0xf0]  ;;  %v1461_v24 = vor.u32 %v1879_v21, %v1460_v20  ;;  %v54_v25 = vld [vmem:[%s2515_s0 + $0x20] sm:$0xff]  ;;  %v1877_v28 = vld [vmem:[%s2518_s3 + $0x44] sm:$0xf0] }
   0xd   :  { %267 = vmatpush.bf16.msra.mxu2 %v1481_v15  ;;  %v1465_v26 = vor.u32 %v1878_v22, %v1462_v23  ;;  %v1452_v27 = vld [vmem:[%s2518_s3 + $0x40] sm:$0xf]  ;;  %v55_v29 = vld [vmem:[%s2515_s0 + $0x28] sm:$0xff]  ;;  %v1876_v30 = vld [vmem:[%s2518_s3 + $0x44] sm:$0xf] }
   0xe   :  { %1414 = vmatmul.msk.bf16.vlgmr.msra.gmra.mxu0 %vm82_vm0, %v58_v4  ;;  %v1454_v31 = vld [vmem:[%s2518_s3 + $0x48] sm:$0xf0]  ;;  %v1453_v32 = vor.u32 %v1877_v28, %v1452_v27  ;;  %v60_v33 = vpack.c.bf16 %v55_v29, %v54_v25  ;;  %v56_v35 = vld [vmem:[%s2515_s0 + $0x30] sm:$0xff]  ;;  %v57_v36 = vld [vmem:[%s2515_s0 + $0x38] sm:$0xff] }
   0xf   :  { %v1457_v34 = vor.u32 %v1876_v30, %v1454_v31  ;;  %v61_v37 = vpack.c.bf16 %v57_v36, %v56_v35  ;;  %v1444_v38 = vld [vmem:[%s2518_s3 + $0x30] sm:$0xf]  ;;  %v1875_v39 = vld [vmem:[%s2518_s3 + $0x34] sm:$0xf0]  ;;  %v1874_v40 = vld [vmem:[%s2518_s3 + $0x34] sm:$0xf] }
  0x10   :  { %239 = vmatpush.bf16.msra.mxu1 %v1469_v18  ;;  %1981 = vmatpush.bf16.msra.mxu3 %v1469_v18  ;;  %v1445_v41 = vor.u32 %v1875_v39, %v1444_v38  ;;  %v1446_v42 = vld [vmem:[%s2518_s3 + $0x38] sm:$0xf0]  ;;  %v1436_v44 = vld [vmem:[%s2518_s3 + $0x20] sm:$0xf]  ;;  %v1873_v45 = vld [vmem:[%s2518_s3 + $0x24] sm:$0xf0] }
  0x11   :  { %268 = vmatpush.bf16.msra.mxu2 %v1473_v19  ;;  %v1449_v43 = vor.u32 %v1874_v40, %v1446_v42  ;;  %v1872_v46 = vld [vmem:[%s2518_s3 + $0x24] sm:$0xf]  ;;  %v1437_v47 = vor.u32 %v1873_v45, %v1436_v44  ;;  %v1438_v48 = vld [vmem:[%s2518_s3 + $0x28] sm:$0xf0]  ;;  %v1428_v50 = vld [vmem:[%s2518_s3 + $0x10] sm:$0xf] }
  0x12   :  { %v1441_v49 = vor.u32 %v1872_v46, %v1438_v48  ;;  %v1871_v51 = vld [vmem:[%s2518_s3 + $0x14] sm:$0xf0]  ;;  %v1870_v52 = vld [vmem:[%s2518_s3 + $0x14] sm:$0xf]  ;;  %v1430_v54 = vld [vmem:[%s2518_s3 + $0x18] sm:$0xf0] }
  0x13   :  { %v1429_v53 = vor.u32 %v1871_v51, %v1428_v50  ;;  %v1433_v55 = vor.u32 %v1870_v52, %v1430_v54  ;;  %v1420_v56 = vld [vmem:[%s2518_s3] sm:$0xf]  ;;  %v1869_v57 = vld [vmem:[%s2518_s3 + $0x4] sm:$0xf0]  ;;  %v1868_v58 = vld [vmem:[%s2518_s3 + $0x4] sm:$0xf] }
  0x14   :  { %240 = vmatpush.bf16.msra.mxu1 %v1461_v24  ;;  %1982 = vmatpush.bf16.msra.mxu3 %v1461_v24  ;;  %v1421_v59 = vor.u32 %v1869_v57, %v1420_v56  ;;  %v1422_v60 = vld [vmem:[%s2518_s3 + $0x8] sm:$0xf0]  ;;  %v2264_v63 = vld [vmem:[%s2517_s2] ss:$0 sm:$0xff]  ;;  %v1946_v14 = vld [vmem:[#allocation2 + $0x1ec] sm:$0xf0] }
  0x15   :  { %269 = vmatpush.bf16.msra.mxu2 %v1465_v26  ;;  %v1425_v61 = vor.u32 %v1868_v58, %v1422_v60  ;;  %v1724_v13 = vld [vmem:[#allocation2 + $0x1e0] sm:$0xf]  ;;  %v1944_v15 = vld [vmem:[#allocation2 + $0x1e4] sm:$0xf]  ;;  %v1726_v18 = vld [vmem:[#allocation2 + $0x1f0] sm:$0xf0] }
  0x16   :  { %v1725_v17 = vor.u32 %v1946_v14, %v1724_v13  ;;  %v1708_v19 = vld [vmem:[#allocation2 + $0x1c0] sm:$0xf]  ;;  %v1942_v20 = vld [vmem:[#allocation2 + $0x1cc] sm:$0xf0]  ;;  %v1729_v21 = vor.u32 %v1944_v15, %v1726_v18  ;;  %v1940_v22 = vld [vmem:[#allocation2 + $0x1c4] sm:$0xf] }
  0x17   :  { %v1710_v23 = vld [vmem:[#allocation2 + $0x1d0] sm:$0xf0]  ;;  %v1709_v24 = vor.u32 %v1942_v20, %v1708_v19  ;;  %v1692_v25 = vld [vmem:[#allocation2 + $0x1a0] sm:$0xf]  ;;  %v1914_v27 = vld [vmem:[#allocation2 + $0xec] sm:$0xf0] }
  0x18   :  { %241 = vmatpush.bf16.msra.mxu1 %v1453_v32  ;;  %1983 = vmatpush.bf16.msra.mxu3 %v1453_v32  ;;  %v1596_v26 = vld [vmem:[#allocation2 + $0xe0] sm:$0xf]  ;;  %v1713_v28 = vor.u32 %v1940_v22, %v1710_v23  ;;  %v1938_v29 = vld [vmem:[#allocation2 + $0x1ac] sm:$0xf0]  ;;  %v1912_v31 = vld [vmem:[#allocation2 + $0xe4] sm:$0xf] }
  0x19   :  { %270 = vmatpush.bf16.msra.mxu2 %v1457_v34  ;;  %743 = vmatpush.bf16.msrb.mxu0 %v1725_v17  ;;  %v1597_v30 = vor.u32 %v1914_v27, %v1596_v26  ;;  %v1598_v32 = vld [vmem:[#allocation2 + $0xf0] sm:$0xf0]  ;;  %v1936_v34 = vld [vmem:[#allocation2 + $0x1a4] sm:$0xf]  ;;  %v1580_v36 = vld [vmem:[#allocation2 + $0xc0] sm:$0xf]  ;;  %v1693_v40 = vor.u32 %v1938_v29, %v1692_v25 }
  0x1a   :  { %v1694_v35 = vld [vmem:[#allocation2 + $0x1b0] sm:$0xf0]  ;;  %v1908_v38 = vld [vmem:[#allocation2 + $0xc4] sm:$0xf]  ;;  %v1934_v44 = vld [vmem:[#allocation2 + $0x18c] sm:$0xf0] }
  0x1b   :  { %v1582_v39 = vld [vmem:[#allocation2 + $0xd0] sm:$0xf0]  ;;  %v1564_v45 = vld [vmem:[#allocation2 + $0xa0] sm:$0xf]  ;;  %v1906_v48 = vld [vmem:[#allocation2 + $0xac] sm:$0xf0] }
  0x1c   :  { %242 = vmatpush.bf16.msra.mxu1 %v1445_v41  ;;  %1984 = vmatpush.bf16.msra.mxu3 %v1445_v41  ;;  %v1585_v42 = vor.u32 %v1908_v38, %v1582_v39  ;;  %v1566_v50 = vld [vmem:[#allocation2 + $0xb0] sm:$0xf0]  ;;  %v1932_v54 = vld [vmem:[#allocation2 + $0x184] sm:$0xf]  ;;  %v1548_v56 = vld [vmem:[#allocation2 + $0x80] sm:$0xf] }
  0x1d   :  { %271 = vmatpush.bf16.msra.mxu2 %v1449_v43  ;;  %744 = vmatpush.bf16.msrb.mxu0 %v1709_v24  ;;  %v1676_v43 = vld [vmem:[#allocation2 + $0x180] sm:$0xf]  ;;  %v1900_v60 = vld [vmem:[#allocation2 + $0x84] sm:$0xf]  ;;  %v1534_v19 = vld [vmem:[#allocation2 + $0x70] sm:$0xf0] }
  0x1e   :  { %1415 = vmatmul.msk.bf16.gmra.mxu0 %vm82_vm0, %v59_v7  ;;  %v1677_v57 = vor.u32 %v1934_v44, %v1676_v43  ;;  %v1532_v15 = vld [vmem:[#allocation2 + $0x60] sm:$0xf]  ;;  %v1896_v17 = vld [vmem:[#allocation2 + $0x64] sm:$0xf]  ;;  %v1894_v22 = vld [vmem:[#allocation2 + $0x4c] sm:$0xf0] }
  0x1f   :  { %v1537_v20 = vor.u32 %v1896_v17, %v1534_v19  ;;  %v1892_v23 = vld [vmem:[#allocation2 + $0x44] sm:$0xf]  ;;  %v1518_v25 = vld [vmem:[#allocation2 + $0x50] sm:$0xf0]  ;;  %v1913_v17 = vld [vmem:[#allocation2 + $0xec] sm:$0xf] }
  0x20   :  { %243 = vmatpush.bf16.msra.mxu1 %v1437_v47  ;;  %1985 = vmatpush.bf16.msra.mxu3 %v1437_v47  ;;  %v1697_v47 = vor.u32 %v1936_v34, %v1694_v35  ;;  %v1928_v26 = vld [vmem:[#allocation2 + $0x164] sm:$0xf]  ;;  %v1521_v27 = vor.u32 %v1892_v23, %v1518_v25  ;;  %v1646_v39 = vld [vmem:[#allocation2 + $0x150] sm:$0xf0]  ;;  %v1941_v25 = vld [vmem:[#allocation2 + $0x1cc] sm:$0xf] }
  0x21   :  { %272 = vmatpush.bf16.msra.mxu2 %v1441_v49  ;;  %v1904_v49 = vld [vmem:[#allocation2 + $0xa4] sm:$0xf]  ;;  %745 = vmatpush.bf16.msrb.mxu0 %v1693_v40 }
  0x22   :  { %v1569_v58 = vor.u32 %v1904_v49, %v1566_v50  ;;  %v1888_v34 = vld [vmem:[#allocation2 + $0x24] sm:$0xf] }
  0x23   :  { %v1924_v38 = vld [vmem:[#allocation2 + $0x144] sm:$0xf] }
  0x24   :  { %244 = vmatpush.bf16.msra.mxu1 %v1429_v53  ;;  %1986 = vmatpush.bf16.msra.mxu3 %v1429_v53  ;;  %v1565_v53 = vor.u32 %v1906_v48, %v1564_v45  ;;  %v1649_v40 = vor.u32 %v1924_v38, %v1646_v39  ;;  %v1884_v43 = vld [vmem:[#allocation2 + $0x4] sm:$0xf]  ;;  %v1486_v45 = vld [vmem:[#allocation2 + $0x10] sm:$0xf0]  ;;  %v1922_v48 = vld [vmem:[#allocation2 + $0x12c] sm:$0xf0] }
  0x25   :  { %273 = vmatpush.bf16.msra.mxu2 %v1433_v55  ;;  %v1678_v55 = vld [vmem:[#allocation2 + $0x190] sm:$0xf0]  ;;  %746 = vmatpush.bf16.msrb.mxu0 %v1677_v57  ;;  %v1920_v49 = vld [vmem:[#allocation2 + $0x124] sm:$0xf] }
  0x26   :  { %v1614_v57 = vld [vmem:[#allocation2 + $0x110] sm:$0xf0] }
  0x28   :  { %245 = vmatpush.bf16.msra.mxu1 %v1421_v59  ;;  %1987 = vmatpush.bf16.msra.mxu3 %v1421_v59  ;;  %v1902_v59 = vld [vmem:[#allocation2 + $0x8c] sm:$0xf0] }
  0x29   :  { %274 = vmatpush.bf16.msra.mxu2 %v1425_v61  ;;  %v1550_v61 = vld [vmem:[#allocation2 + $0x90] sm:$0xf0] }
  0x2c   :  { %714 = vmatpush.bf16.msrb.mxu3 %v1597_v30  ;;  %v1926_v30 = vld [vmem:[#allocation2 + $0x14c] sm:$0xf0] }
  0x2d   :  { %801 = vmatpush.bf16.msrb.mxu2 %v1729_v21  ;;  %v1516_v21 = vld [vmem:[#allocation2 + $0x40] sm:$0xf] }
  0x2e   :  { %1416 = vmatmul.msk.bf16.gmra.mxu0 %vm82_vm0, %v60_v33  ;;  %v1601_v33 = vor.u32 %v1912_v31, %v1598_v32  ;;  %v1517_v24 = vor.u32 %v1894_v22, %v1516_v21  ;;  %v1500_v32 = vld [vmem:[#allocation2 + $0x20] sm:$0xf] }
  0x30   :  { %772 = vmatpush.bf16.msrb.mxu1 %v1601_v33  ;;  %v1890_v33 = vld [vmem:[#allocation2 + $0x2c] sm:$0xf0] }
  0x31   :  { %802 = vmatpush.bf16.msrb.mxu2 %v1713_v28  ;;  %v1644_v28 = vld [vmem:[#allocation2 + $0x140] sm:$0xf]  ;;  %v1501_v35 = vor.u32 %v1890_v33, %v1500_v32  ;;  %v1939_v33 = vld [vmem:[#allocation2 + $0x1b4] sm:$0xf0] }
  0x32   :  { %v1645_v31 = vor.u32 %v1926_v30, %v1644_v28  ;;  %v1903_v28 = vld [vmem:[#allocation2 + $0x94] sm:$0xf0] }
  0x34   :  { %773 = vmatpush.bf16.msrb.mxu1 %v1585_v42  ;;  %v1886_v42 = vld [vmem:[#allocation2 + $0xc] sm:$0xf0] }
  0x35   :  { %803 = vmatpush.bf16.msrb.mxu2 %v1697_v47  ;;  %v1628_v47 = vld [vmem:[#allocation2 + $0x120] sm:$0xf] }
  0x36   :  { %v1629_v50 = vor.u32 %v1922_v48, %v1628_v47  ;;  %v1702_v47 = vld [vmem:[#allocation2 + $0x1b8] sm:$0xf0] }
  0x38   :  { %774 = vmatpush.bf16.msrb.mxu1 %v1569_v58 }
  0x3e   :  { %1417 = vmatmul.msk.bf16.gmra.mxu0 %vm82_vm0, %v61_v37  ;;  %v1910_v37 = vld [vmem:[#allocation2 + $0xcc] sm:$0xf0] }
  0x3f   :  { %v1581_v41 = vor.u32 %v1910_v37, %v1580_v36  ;;  %v1502_v36 = vld [vmem:[#allocation2 + $0x30] sm:$0xf0] }
  0x40   :  { %v1505_v37 = vor.u32 %v1888_v34, %v1502_v36  ;;  %v1909_v34 = vld [vmem:[#allocation2 + $0xcc] sm:$0xf]  ;;  %v1590_v36 = vld [vmem:[#allocation2 + $0xd8] sm:$0xf0] }
  0x41   :  { %715 = vmatpush.bf16.msrb.mxu3 %v1581_v41  ;;  %v1484_v41 = vld [vmem:[#allocation2] sm:$0xf]  ;;  %v1593_v39 = vor.u32 %v1909_v34, %v1590_v36  ;;  %v1925_v34 = vld [vmem:[#allocation2 + $0x14c] sm:$0xf] }
  0x42   :  { %v1485_v44 = vor.u32 %v1886_v42, %v1484_v41 }
  0x45   :  { %716 = vmatpush.bf16.msrb.mxu3 %v1565_v53  ;;  %v1612_v53 = vld [vmem:[#allocation2 + $0x100] sm:$0xf] }
  0x8b   :  { %v104_v62 = vpop.f32.mrf.mxu0 }
  0x8c   :  { %v105_v0 = vadd.f32 %v2264_v63, %v104_v62 }
  0x8e   :  { %v124_v3 = vmax.f32 %v105_v0, 0.0 }
  0x93   :  { %v106_v1 = vpop.f32.mrf.mxu0 }
  0x94   :  { %v107_v2 = vadd.f32 %v2264_v63, %v106_v1  ;;  %v1660_v1 = vld [vmem:[#allocation2 + $0x160] sm:$0xf] }
  0x96   :  { %v125_v4 = vmax.f32 %v107_v2, 0.0  ;;  %v1930_v2 = vld [vmem:[#allocation2 + $0x16c] sm:$0xf0] }
  0x98   :  { %v132_v5 = vpack.c.bf16 %v125_v4, %v124_v3  ;;  %v1681_v3 = vor.u32 %v1932_v54, %v1678_v55  ;;  %v1918_v54 = vld [vmem:[#allocation2 + $0x10c] sm:$0xf0]  ;;  %v1916_v55 = vld [vmem:[#allocation2 + $0x104] sm:$0xf] }
  0x99   :  { %v1617_v58 = vor.u32 %v1916_v55, %v1614_v57  ;;  %v1935_v55 = vld [vmem:[#allocation2 + $0x194] sm:$0xf0]  ;;  %v1574_v57 = vld [vmem:[#allocation2 + $0xb8] sm:$0xf0] }
  0x9a   :  { %246 = vmatmul.bf16.vlgmr.msra.gmra.mxu1 %v132_v5  ;;  %275 = vmatmul.bf16.vlgmr.msra.gmra.mxu2 %v132_v5  ;;  %v1549_v5 = vor.u32 %v1902_v59, %v1548_v56  ;;  %v1613_v56 = vor.u32 %v1918_v54, %v1612_v53  ;;  %v1604_v59 = vld [vmem:[#allocation2 + $0xe8] sm:$0xf] }
  0x9b   :  { %v109_v6 = vpop.f32.mrf.mxu0  ;;  %804 = vmatpush.bf16.msrb.mxu2 %v1681_v3  ;;  %v1947_v3 = vld [vmem:[#allocation2 + $0x1f4] sm:$0xf0] }
  0x9c   :  { %v110_v7 = vadd.f32 %v2264_v63, %v109_v6  ;;  %v1553_v6 = vor.u32 %v1900_v60, %v1550_v61  ;;  %717 = vmatpush.bf16.msrb.mxu3 %v1549_v5  ;;  %v1915_v60 = vld [vmem:[#allocation2 + $0xf4] sm:$0xf0]  ;;  %v152_v5 = vld [vmem:[%s2519_s4] sm:$0x3] }
  0x9d   :  { %v1605_v61 = vor.u32 %v1915_v60, %v1604_v59  ;;  %v2280_v23 = vperm.slane %v152_v5, 1 }
  0x9e   :  { %v126_v10 = vmax.f32 %v110_v7, 0.0  ;;  %v1661_v7 = vor.u32 %v1930_v2, %v1660_v1  ;;  %775 = vmatpush.bf16.msrb.mxu1 %v1553_v6  ;;  %v1732_v1 = vld [vmem:[#allocation2 + $0x1e8] sm:$0xf] }
  0xa0   :  { %747 = vmatpush.bf16.msrb.mxu0 %v1661_v7  ;;  %v2277_v7 = vperm.slane %v152_v5, 0 }
  0xa2   :  { %776 = vmatpush.bf16.msrb.mxu1 %v1537_v20 }
  0xa3   :  { %v111_v8 = vpop.f32.mrf.mxu0 }
  0xa4   :  { %v112_v9 = vadd.f32 %v2264_v63, %v111_v8  ;;  %748 = vmatpush.bf16.msrb.mxu0 %v1645_v31 }
  0xa6   :  { %v127_v11 = vmax.f32 %v112_v9, 0.0  ;;  %777 = vmatpush.bf16.msrb.mxu1 %v1521_v27  ;;  %v1556_v27 = vld [vmem:[#allocation2 + $0x88] sm:$0xf] }
  0xa7   :  { %v1557_v32 = vor.u32 %v1903_v28, %v1556_v27 }
  0xa8   :  { %v133_v12 = vpack.c.bf16 %v127_v11, %v126_v10  ;;  %749 = vmatpush.bf16.msrb.mxu0 %v1629_v50  ;;  %v1540_v50 = vld [vmem:[#allocation2 + $0x68] sm:$0xf] }
  0xaa   :  { %251 = vmatmul.bf16.gmra.mxu1 %v133_v12  ;;  %280 = vmatmul.bf16.gmra.mxu2 %v133_v12 }
  0xab   :  { %v114_v16 = vpop.f32.mrf.mxu0  ;;  %778 = vmatpush.bf16.msrb.mxu1 %v1505_v37 }
  0xac   :  { %v115_v46 = vadd.f32 %v2264_v63, %v114_v16  ;;  %v1898_v16 = vld [vmem:[#allocation2 + $0x6c] sm:$0xf0]  ;;  %750 = vmatpush.bf16.msrb.mxu0 %v1613_v56  ;;  %v1905_v56 = vld [vmem:[#allocation2 + $0xac] sm:$0xf] }
  0xad   :  { %v1533_v18 = vor.u32 %v1898_v16, %v1532_v15  ;;  %v1943_v16 = vld [vmem:[#allocation2 + $0x1d4] sm:$0xf0]  ;;  %v1577_v60 = vor.u32 %v1905_v56, %v1574_v57  ;;  %v1885_v57 = vld [vmem:[#allocation2 + $0xc] sm:$0xf] }
  0xae   :  { %v128_v62 = vmax.f32 %v115_v46, 0.0  ;;  %v1489_v46 = vor.u32 %v1884_v43, %v1486_v45  ;;  %v1919_v56 = vld [vmem:[#allocation2 + $0x114] sm:$0xf0] }
  0xaf   :  { %718 = vmatpush.bf16.msrb.mxu3 %v1533_v18  ;;  %v1606_v18 = vld [vmem:[#allocation2 + $0xf8] sm:$0xf0] }
  0xb0   :  { %779 = vmatpush.bf16.msrb.mxu1 %v1489_v46  ;;  %v1609_v21 = vor.u32 %v1913_v17, %v1606_v18  ;;  %v1937_v46 = vld [vmem:[#allocation2 + $0x1ac] sm:$0xf] }
  0xb1   :  { %v1705_v48 = vor.u32 %v1937_v46, %v1702_v47  ;;  %v1923_v47 = vld [vmem:[#allocation2 + $0x134] sm:$0xf0] }
  0xb3   :  { %v116_v51 = vpop.f32.mrf.mxu0  ;;  %719 = vmatpush.bf16.msrb.mxu3 %v1517_v24 }
  0xb4   :  { %v117_v52 = vadd.f32 %v2264_v63, %v116_v51  ;;  %v1630_v51 = vld [vmem:[#allocation2 + $0x130] sm:$0xf0]  ;;  %888 = vmatpush.bf16.msra.mxu1 %v1609_v21  ;;  %v1929_v21 = vld [vmem:[#allocation2 + $0x16c] sm:$0xf] }
  0xb6   :  { %v129_v0 = vmax.f32 %v117_v52, 0.0  ;;  %v1633_v52 = vor.u32 %v1920_v49, %v1630_v51  ;;  %v1899_v51 = vld [vmem:[#allocation2 + $0x74] sm:$0xf0] }
  0xb7   :  { %720 = vmatpush.bf16.msrb.mxu3 %v1501_v35  ;;  %v1541_v54 = vor.u32 %v1899_v51, %v1540_v50 }
  0xb8   :  { %v134_v4 = vpack.c.bf16 %v129_v0, %v128_v62  ;;  %v1588_v62 = vld [vmem:[#allocation2 + $0xc8] sm:$0xf]  ;;  %v1911_v0 = vld [vmem:[#allocation2 + $0xd4] sm:$0xf0]  ;;  %889 = vmatpush.bf16.msra.mxu1 %v1593_v39  ;;  %v1893_v39 = vld [vmem:[#allocation2 + $0x4c] sm:$0xf] }
  0xb9   :  { %v1589_v2 = vor.u32 %v1911_v0, %v1588_v62  ;;  %v1933_v62 = vld [vmem:[#allocation2 + $0x18c] sm:$0xf]  ;;  %v1686_v0 = vld [vmem:[#allocation2 + $0x198] sm:$0xf0] }
  0xba   :  { %256 = vmatmul.bf16.vlgmr.msra.gmra.mxu3 %v134_v4  ;;  %285 = vmatmul.bf16.gmra.mxu2 %v134_v4  ;;  %v1733_v4 = vor.u32 %v1947_v3, %v1732_v1  ;;  %v1689_v1 = vor.u32 %v1933_v62, %v1686_v0  ;;  %v1895_v3 = vld [vmem:[#allocation2 + $0x54] sm:$0xf0]  ;;  %v1622_v62 = vld [vmem:[#allocation2 + $0x118] sm:$0xf0] }
  0xbb   :  { %v119_v8 = vpop.f32.mrf.mxu0  ;;  %721 = vmatpush.bf16.msrb.mxu3 %v1485_v44 }
  0xbc   :  { %v120_v9 = vadd.f32 %v2264_v63, %v119_v8  ;;  %859 = vmatpush.bf16.msra.mxu0 %v1733_v4  ;;  %v1945_v8 = vld [vmem:[#allocation2 + $0x1ec] sm:$0xf]  ;;  %890 = vmatpush.bf16.msra.mxu1 %v1577_v60  ;;  %v1668_v4 = vld [vmem:[#allocation2 + $0x168] sm:$0xf] }
  0xbe   :  { %v130_v12 = vmax.f32 %v120_v9, 0.0  ;;  %v1734_v9 = vld [vmem:[#allocation2 + $0x1f8] sm:$0xf0] }
  0xbf   :  { %830 = vmatpush.bf16.msra.mxu3 %v1605_v61 }
  0xc3   :  { %v121_v10 = vpop.f32.mrf.mxu0  ;;  %831 = vmatpush.bf16.msra.mxu3 %v1589_v2  ;;  %v1524_v2 = vld [vmem:[#allocation2 + $0x48] sm:$0xf] }
  0xc4   :  { %v122_v11 = vadd.f32 %v2264_v63, %v121_v10  ;;  %v1662_v63 = vld [vmem:[#allocation2 + $0x170] sm:$0xf0]  ;;  %v1737_v10 = vor.u32 %v1945_v8, %v1734_v9  ;;  %v1525_v8 = vor.u32 %v1895_v3, %v1524_v2  ;;  %v1931_v9 = vld [vmem:[#allocation2 + $0x174] sm:$0xf0] }
  0xc5   :  { %v1665_v29 = vor.u32 %v1928_v26, %v1662_v63  ;;  %v1718_v26 = vld [vmem:[#allocation2 + $0x1d8] sm:$0xf0] }
  0xc6   :  { %v131_v13 = vmax.f32 %v122_v11, 0.0  ;;  %v1572_v11 = vld [vmem:[#allocation2 + $0xa8] sm:$0xf]  ;;  %v1721_v63 = vor.u32 %v1941_v25, %v1718_v26  ;;  %v1897_v25 = vld [vmem:[#allocation2 + $0x6c] sm:$0xf] }
  0xc7   :  { %805 = vmatpush.bf16.msrb.mxu2 %v1665_v29  ;;  %v1700_v29 = vld [vmem:[#allocation2 + $0x1a8] sm:$0xf]  ;;  %v1542_v26 = vld [vmem:[#allocation2 + $0x78] sm:$0xf0] }
  0xc8   :  { %v135_v14 = vpack.c.bf16 %v131_v13, %v130_v12  ;;  %v1907_v12 = vld [vmem:[#allocation2 + $0xb4] sm:$0xf0]  ;;  %v1716_v13 = vld [vmem:[#allocation2 + $0x1c8] sm:$0xf]  ;;  %v1701_v35 = vor.u32 %v1939_v33, %v1700_v29 }
  0xc9   :  { %v1573_v15 = vor.u32 %v1907_v12, %v1572_v11  ;;  %v1717_v20 = vor.u32 %v1943_v16, %v1716_v13  ;;  %v1669_v11 = vor.u32 %v1931_v9, %v1668_v4  ;;  %v1558_v12 = vld [vmem:[#allocation2 + $0x98] sm:$0xf0]  ;;  %v1508_v29 = vld [vmem:[#allocation2 + $0x28] sm:$0xf]  ;;  %v1927_v33 = vld [vmem:[#allocation2 + $0x154] sm:$0xf0] }
  0xca   :  { %261 = vmatmul.bf16.gmra.mxu3 %v135_v14  ;;  %290 = vmatmul.bf16.gmra.mxu2 %v135_v14 }
  0xcb   :  { %806 = vmatpush.bf16.msrb.mxu2 %v1649_v40  ;;  %832 = vmatpush.bf16.msra.mxu3 %v1573_v15 }
  0xcc   :  { %860 = vmatpush.bf16.msra.mxu0 %v1717_v20 }
  0xcf   :  { %807 = vmatpush.bf16.msrb.mxu2 %v1633_v52  ;;  %833 = vmatpush.bf16.msra.mxu3 %v1557_v32  ;;  %v1684_v52 = vld [vmem:[#allocation2 + $0x188] sm:$0xf] }
  0xd0   :  { %861 = vmatpush.bf16.msra.mxu0 %v1701_v35  ;;  %v1685_v59 = vor.u32 %v1935_v55, %v1684_v52  ;;  %v1654_v35 = vld [vmem:[#allocation2 + $0x158] sm:$0xf0]  ;;  %v1921_v52 = vld [vmem:[#allocation2 + $0x12c] sm:$0xf] }
  0xd3   :  { %808 = vmatpush.bf16.msrb.mxu2 %v1617_v58  ;;  %834 = vmatpush.bf16.msra.mxu3 %v1541_v54  ;;  %v1620_v54 = vld [vmem:[#allocation2 + $0x108] sm:$0xf] }
  0xd4   :  { %862 = vmatpush.bf16.msra.mxu0 %v1685_v59  ;;  %v1621_v2 = vor.u32 %v1919_v56, %v1620_v54 }
  0xd7   :  { %917 = vmatpush.bf16.msra.mxu2 %v1737_v10  ;;  %v1901_v10 = vld [vmem:[#allocation2 + $0x8c] sm:$0xf]  ;;  %835 = vmatpush.bf16.msra.mxu3 %v1525_v8 }
  0xd8   :  { %v1561_v15 = vor.u32 %v1901_v10, %v1558_v12  ;;  %863 = vmatpush.bf16.msra.mxu0 %v1669_v11 }
  0xda   :  { %891 = vmatpush.bf16.msra.mxu1 %v1561_v15 }
  0xdb   :  { %918 = vmatpush.bf16.msra.mxu2 %v1721_v63  ;;  %v1545_v63 = vor.u32 %v1897_v25, %v1542_v26 }
  0xde   :  { %892 = vmatpush.bf16.msra.mxu1 %v1545_v63 }
  0xdf   :  { %919 = vmatpush.bf16.msra.mxu2 %v1705_v48  ;;  %v1889_v48 = vld [vmem:[#allocation2 + $0x2c] sm:$0xf] }
  0xe3   :  { %920 = vmatpush.bf16.msra.mxu2 %v1689_v1 }
 0x117   :  { %v247_v6 = vpop.f32.mrf.mxu1 }
 0x118   :  { %v248_v19 = vadd.f32 %v247_v6, %v2277_v7 }
 0x11a   :  { %v296_v30 = vmax.f32 %v248_v19, 0.0 }
 0x11d   :  { %v276_v14 = vpop.f32.mrf.mxu2 }
 0x11e   :  { %v277_v37 = vadd.f32 %v276_v14, %v2280_v23 }
 0x11f   :  { %v249_v22 = vpop.f32.mrf.mxu1 }
 0x120   :  { %v250_v24 = vadd.f32 %v249_v22, %v2277_v7  ;;  %v297_v43 = vmax.f32 %v277_v37, 0.0  ;;  %v1670_v22 = vld [vmem:[#allocation2 + $0x178] sm:$0xf0]  ;;  %v1657_v37 = vor.u32 %v1925_v34, %v1654_v35  ;;  %v1949_v35 = vld [vmem:[%s2522_s7 + $0x8] sm:$0xff] }
 0x121   :  { %v1959_v34 = vld [vmem:[%s2522_s7 + $0x58] sm:$0xff] }
 0x122   :  { %v298_v31 = vmax.f32 %v250_v24, 0.0  ;;  %v1673_v24 = vor.u32 %v1929_v21, %v1670_v22 }
 0x124   :  { %v2284_v38 = vpack.c.bf16 %v298_v31, %v296_v30  ;;  %921 = vmatpush.bf16.msra.mxu2 %v1673_v24  ;;  %v1891_v30 = vld [vmem:[#allocation2 + $0x34] sm:$0xf0]  ;;  %v1652_v31 = vld [vmem:[#allocation2 + $0x148] sm:$0xf] }
 0x125   :  { %v278_v40 = vpop.f32.mrf.mxu2  ;;  %v1509_v32 = vor.u32 %v1891_v30, %v1508_v29  ;;  %v1653_v36 = vor.u32 %v1927_v33, %v1652_v31  ;;  %v1961_v30 = vld [vmem:[%s2522_s7 + $0x68] sm:$0xff]  ;;  %v1951_v31 = vld [vmem:[%s2522_s7 + $0x18] sm:$0xff]  ;;  %v1950_v33 = vld [vmem:[%s2522_s7 + $0x10] sm:$0xff] }
 0x126   :  { %v279_v41 = vadd.f32 %v278_v40, %v2280_v23  ;;  %722 = vmatmul.bf16.vlgmr.msrb.gmra.mxu3 %v2284_v38  ;;  %780 = vmatmul.bf16.vlgmr.msrb.gmra.mxu1 %v2284_v38  ;;  %v1526_v40 = vld [vmem:[#allocation2 + $0x58] sm:$0xf0] }
 0x127   :  { %v252_v42 = vpop.f32.mrf.mxu1  ;;  %836 = vmatpush.bf16.msra.mxu3 %v1509_v32  ;;  %864 = vmatpush.bf16.msra.mxu0 %v1653_v36  ;;  %v1960_v32 = vld [vmem:[%s2522_s7 + $0x60] sm:$0xff]  ;;  %v1958_v36 = vld [vmem:[%s2522_s7 + $0x50] sm:$0xff] }
 0x128   :  { %v299_v44 = vmax.f32 %v279_v41, 0.0  ;;  %v253_v53 = vadd.f32 %v252_v42, %v2277_v7  ;;  %v1492_v41 = vld [vmem:[#allocation2 + $0x8] sm:$0xf]  ;;  %v1529_v42 = vor.u32 %v1893_v39, %v1526_v40  ;;  %922 = vmatpush.bf16.msra.mxu2 %v1657_v37  ;;  %v1948_v37 = vld [vmem:[%s2522_s7] sm:$0xff] }
 0x129   :  { %v1957_v39 = vld [vmem:[%s2522_s7 + $0x48] sm:$0xff]  ;;  %v1956_v40 = vld [vmem:[%s2522_s7 + $0x40] sm:$0xff] }
 0x12a   :  { %v2289_v45 = vpack.c.bf16 %v299_v44, %v297_v43  ;;  %v300_v5 = vmax.f32 %v253_v53, 0.0  ;;  %v1887_v43 = vld [vmem:[#allocation2 + $0x14] sm:$0xf0]  ;;  %v1636_v44 = vld [vmem:[#allocation2 + $0x128] sm:$0xf]  ;;  %893 = vmatpush.bf16.msra.mxu1 %v1529_v42 }
 0x12b   :  { %v1493_v46 = vor.u32 %v1887_v43, %v1492_v41  ;;  %v1637_v50 = vor.u32 %v1923_v47, %v1636_v44  ;;  %v1638_v53 = vld [vmem:[#allocation2 + $0x138] sm:$0xf0]  ;;  %v2375_v43 = vld [vmem:[%s2521_s6] sm:$0xf] }
 0x12c   :  { %751 = vmatmul.bf16.vlgmr.msrb.gmra.mxu0 %v2289_v45  ;;  %809 = vmatmul.bf16.vlgmr.msrb.gmra.mxu2 %v2289_v45  ;;  %v1641_v55 = vor.u32 %v1921_v52, %v1638_v53  ;;  %v1971_v41 = vld [vmem:[%s2522_s7 + $0xb8] sm:$0xff]  ;;  %v2378_v47 = vperm.slane %v2375_v43, 0  ;;  %v2385_v52 = vperm.slane %v2375_v43, 1 }
 0x12d   :  { %v281_v49 = vpop.f32.mrf.mxu2  ;;  %837 = vmatpush.bf16.msra.mxu3 %v1493_v46  ;;  %865 = vmatpush.bf16.msra.mxu0 %v1637_v50 }
 0x12e   :  { %v282_v13 = vadd.f32 %v281_v49, %v2280_v23  ;;  %v1510_v49 = vld [vmem:[#allocation2 + $0x38] sm:$0xf0]  ;;  %923 = vmatpush.bf16.msra.mxu2 %v1641_v55 }
 0x12f   :  { %v254_v58 = vpop.f32.mrf.mxu1  ;;  %v1513_v51 = vor.u32 %v1889_v48, %v1510_v49  ;;  %v1970_v48 = vld [vmem:[%s2522_s7 + $0xb0] sm:$0xff] }
 0x130   :  { %v255_v61 = vadd.f32 %v254_v58, %v2277_v7  ;;  %v301_v18 = vmax.f32 %v282_v13, 0.0  ;;  %v1494_v58 = vld [vmem:[#allocation2 + $0x18] sm:$0xf0] }
 0x131   :  { %894 = vmatpush.bf16.msra.mxu1 %v1513_v51  ;;  %866 = vmatpush.bf16.msra.mxu0 %v1621_v2 }
 0x132   :  { %v302_v6 = vmax.f32 %v255_v61, 0.0  ;;  %v1917_v61 = vld [vmem:[#allocation2 + $0x10c] sm:$0xf] }
 0x133   :  { %v1625_v3 = vor.u32 %v1917_v61, %v1622_v62 }
 0x134   :  { %v2296_v14 = vpack.c.bf16 %v302_v6, %v300_v5  ;;  %v1497_v6 = vor.u32 %v1885_v57, %v1494_v58 }
 0x135   :  { %v283_v16 = vpop.f32.mrf.mxu2  ;;  %924 = vmatpush.bf16.msra.mxu2 %v1625_v3 }
 0x136   :  { %v284_v17 = vadd.f32 %v283_v16, %v2280_v23  ;;  %727 = vmatmul.bf16.gmra.mxu3 %v2296_v14  ;;  %785 = vmatmul.bf16.gmra.mxu1 %v2296_v14 }
 0x137   :  { %895 = vmatpush.bf16.msra.mxu1 %v1497_v6 }
 0x138   :  { %v303_v19 = vmax.f32 %v284_v17, 0.0 }
 0x13a   :  { %v2301_v20 = vpack.c.bf16 %v303_v19, %v301_v18 }
 0x13b   :  { %1312 = vmatpush.bf16.msrb.mxu1 %v1971_v41  ;;  %v1976_v41 = vld [vmem:[%s2522_s7 + $0xe0] sm:$0xff] }
 0x13c   :  { %756 = vmatmul.bf16.gmra.mxu0 %v2301_v20  ;;  %814 = vmatmul.bf16.gmra.mxu2 %v2301_v20 }
 0x13d   :  { %v257_v27 = vpop.f32.mrf.mxu3  ;;  %v286_v28 = vpop.f32.mrf.mxu2 }
 0x13e   :  { %v258_v59 = vadd.f32 %v257_v27, %v2277_v7  ;;  %v287_v60 = vadd.f32 %v286_v28, %v2280_v23 }
 0x13f   :  { %1313 = vmatpush.bf16.msrb.mxu1 %v1970_v48 }
 0x140   :  { %v304_v8 = vmax.f32 %v258_v59, 0.0  ;;  %v305_v9 = vmax.f32 %v287_v60, 0.0  ;;  %v1969_v59 = vld [vmem:[%s2522_s7 + $0xa8] sm:$0xff] }
 0x143   :  { %1314 = vmatpush.bf16.msrb.mxu1 %v1969_v59 }
 0x145   :  { %v259_v0 = vpop.f32.mrf.mxu3  ;;  %v288_v1 = vpop.f32.mrf.mxu2 }
 0x146   :  { %v260_v4 = vadd.f32 %v259_v0, %v2277_v7  ;;  %v289_v5 = vadd.f32 %v288_v1, %v2280_v23 }
 0x148   :  { %v306_v10 = vmax.f32 %v260_v4, 0.0  ;;  %v307_v11 = vmax.f32 %v289_v5, 0.0 }
 0x14a   :  { %v316_v12 = vpack.c.bf16 %v306_v10, %v304_v8  ;;  %v317_v13 = vpack.c.bf16 %v307_v11, %v305_v9  ;;  %v1968_v11 = vld [vmem:[%s2522_s7 + $0xa0] sm:$0xff] }
 0x14b   :  { %1315 = vmatpush.bf16.msrb.mxu1 %v1968_v11 }
 0x14c   :  { %732 = vmatmul.bf16.gmra.mxu3 %v316_v12  ;;  %761 = vmatmul.bf16.gmra.mxu0 %v317_v13 }
 0x14d   :  { %790 = vmatmul.bf16.gmra.mxu1 %v316_v12  ;;  %819 = vmatmul.bf16.gmra.mxu2 %v317_v13  ;;  %v262_v15 = vpop.f32.mrf.mxu3  ;;  %v291_v16 = vpop.f32.mrf.mxu2 }
 0x14e   :  { %v263_v17 = vadd.f32 %v262_v15, %v2277_v7  ;;  %v292_v18 = vadd.f32 %v291_v16, %v2280_v23 }
 0x150   :  { %v308_v25 = vmax.f32 %v263_v17, 0.0  ;;  %v309_v26 = vmax.f32 %v292_v18, 0.0 }
 0x155   :  { %v264_v19 = vpop.f32.mrf.mxu3  ;;  %v293_v21 = vpop.f32.mrf.mxu2 }
 0x156   :  { %v265_v22 = vadd.f32 %v264_v19, %v2277_v7  ;;  %v294_v24 = vadd.f32 %v293_v21, %v2280_v23  ;;  %v1955_v7 = vld [vmem:[%s2522_s7 + $0x38] sm:$0xff]  ;;  %v1954_v23 = vld [vmem:[%s2522_s7 + $0x30] sm:$0xff] }
 0x157   :  { %1254 = vmatpush.bf16.msrb.mxu3 %v1955_v7 }
 0x158   :  { %v310_v63 = vmax.f32 %v265_v22, 0.0  ;;  %v311_v27 = vmax.f32 %v294_v24, 0.0 }
 0x15a   :  { %v318_v28 = vpack.c.bf16 %v310_v63, %v308_v25  ;;  %v319_v29 = vpack.c.bf16 %v311_v27, %v309_v26  ;;  %v1967_v25 = vld [vmem:[%s2522_s7 + $0x98] sm:$0xff]  ;;  %v1978_v26 = vld [vmem:[%s2522_s7 + $0xf0] sm:$0xff] }
 0x15b   :  { %1255 = vmatpush.bf16.msrb.mxu3 %v1954_v23  ;;  %1316 = vmatpush.bf16.msrb.mxu1 %v1967_v25 }
 0x15c   :  { %737 = vmatmul.bf16.gmra.mxu3 %v318_v28  ;;  %766 = vmatmul.bf16.gmra.mxu0 %v319_v29 }
 0x15d   :  { %795 = vmatmul.bf16.gmra.mxu1 %v318_v28  ;;  %824 = vmatmul.bf16.gmra.mxu2 %v319_v29 }
 0x16c   :  { %838 = vmatmul.bf16.vlgmr.msra.gmra.mxu3 %v2284_v38  ;;  %867 = vmatmul.bf16.vlgmr.msra.gmra.mxu0 %v2289_v45 }
 0x16d   :  { %896 = vmatmul.bf16.vlgmr.msra.gmra.mxu1 %v2284_v38  ;;  %925 = vmatmul.bf16.vlgmr.msra.gmra.mxu2 %v2289_v45  ;;  %v1963_v38 = vld [vmem:[%s2522_s7 + $0x78] sm:$0xff]  ;;  %v1953_v45 = vld [vmem:[%s2522_s7 + $0x28] sm:$0xff] }
 0x16e   :  { %1283 = vmatpush.bf16.msrb.mxu0 %v1963_v38  ;;  %1256 = vmatpush.bf16.msrb.mxu3 %v1953_v45 }
 0x17c   :  { %843 = vmatmul.bf16.gmra.mxu3 %v2296_v14  ;;  %872 = vmatmul.bf16.gmra.mxu0 %v2301_v20 }
 0x17d   :  { %901 = vmatmul.bf16.gmra.mxu1 %v2296_v14  ;;  %930 = vmatmul.bf16.gmra.mxu2 %v2301_v20  ;;  %v1962_v14 = vld [vmem:[%s2522_s7 + $0x70] sm:$0xff]  ;;  %v1952_v20 = vld [vmem:[%s2522_s7 + $0x20] sm:$0xff] }
 0x17e   :  { %1284 = vmatpush.bf16.msrb.mxu0 %v1962_v14  ;;  %1257 = vmatpush.bf16.msrb.mxu3 %v1952_v20 }
 0x182   :  { %1285 = vmatpush.bf16.msrb.mxu0 %v1961_v30  ;;  %1258 = vmatpush.bf16.msrb.mxu3 %v1951_v31 }
 0x186   :  { %1286 = vmatpush.bf16.msrb.mxu0 %v1960_v32  ;;  %1259 = vmatpush.bf16.msrb.mxu3 %v1950_v33  ;;  %v1966_v32 = vld [vmem:[%s2522_s7 + $0x90] sm:$0xff]  ;;  %v1977_v33 = vld [vmem:[%s2522_s7 + $0xe8] sm:$0xff] }
 0x187   :  { %1317 = vmatpush.bf16.msrb.mxu1 %v1966_v32 }
 0x18a   :  { %1287 = vmatpush.bf16.msrb.mxu0 %v1959_v34  ;;  %1260 = vmatpush.bf16.msrb.mxu3 %v1949_v35 }
 0x18c   :  { %848 = vmatmul.bf16.gmra.mxu3 %v316_v12  ;;  %877 = vmatmul.bf16.gmra.mxu0 %v317_v13 }
 0x18d   :  { %906 = vmatmul.bf16.gmra.mxu1 %v316_v12  ;;  %935 = vmatmul.bf16.gmra.mxu2 %v317_v13  ;;  %v2399_v12 = vld [vmem:[%s2522_s7 + $0xf8] sm:$0xff] }
 0x18e   :  { %1288 = vmatpush.bf16.msrb.mxu0 %v1958_v36  ;;  %1261 = vmatpush.bf16.msrb.mxu3 %v1948_v37 }
 0x18f   :  { %1988 = vmatpush.bf16.msrb.mxu2 %v2399_v12 }
 0x192   :  { %1289 = vmatpush.bf16.msrb.mxu0 %v1957_v39 }
 0x193   :  { %1989 = vmatpush.bf16.msrb.mxu2 %v1978_v26 }
 0x196   :  { %1290 = vmatpush.bf16.msrb.mxu0 %v1956_v40  ;;  %v1965_v40 = vld [vmem:[%s2522_s7 + $0x88] sm:$0xff] }
 0x197   :  { %1990 = vmatpush.bf16.msrb.mxu2 %v1977_v33  ;;  %1318 = vmatpush.bf16.msrb.mxu1 %v1965_v40 }
 0x19b   :  { %1991 = vmatpush.bf16.msrb.mxu2 %v1976_v41 }
 0x19c   :  { %853 = vmatmul.bf16.gmra.mxu3 %v318_v28  ;;  %882 = vmatmul.bf16.gmra.mxu0 %v319_v29 }
 0x19d   :  { %911 = vmatmul.bf16.gmra.mxu1 %v318_v28  ;;  %940 = vmatmul.bf16.gmra.mxu2 %v319_v29 }
 0x1a3   :  { %v781_v42 = vpop.f32.mrf.mxu1 }
 0x1a4   :  { %v782_v57 = vadd.f32 %v781_v42, %v2385_v52 }
 0x1a9   :  { %v723_v44 = vpop.f32.mrf.mxu3  ;;  %v752_v46 = vpop.f32.mrf.mxu0 }
 0x1aa   :  { %v724_v49 = vadd.f32 %v723_v44, %v2378_v47 }
 0x1ab   :  { %v783_v50 = vpop.f32.mrf.mxu1 }
 0x1ac   :  { %v753_v55 = vadd.f32 %v752_v46, %v724_v49  ;;  %v784_v61 = vadd.f32 %v783_v50, %v2385_v52 }
 0x1ae   :  { %v946_v60 = vmax.f32 %v753_v55, 0.0 }
 0x1af   :  { %v810_v51 = vpop.f32.mrf.mxu2 }
 0x1b0   :  { %v811_v62 = vadd.f32 %v810_v51, %v782_v57 }
 0x1b1   :  { %v725_v53 = vpop.f32.mrf.mxu3  ;;  %v754_v54 = vpop.f32.mrf.mxu0 }
 0x1b2   :  { %v726_v56 = vadd.f32 %v725_v53, %v2378_v47  ;;  %v947_v8 = vmax.f32 %v811_v62, 0.0 }
 0x1b3   :  { %v786_v3 = vpop.f32.mrf.mxu1 }
 0x1b4   :  { %v755_v58 = vadd.f32 %v754_v54, %v726_v56  ;;  %v787_v22 = vadd.f32 %v786_v3, %v2385_v52 }
 0x1b6   :  { %v950_v0 = vmax.f32 %v755_v58, 0.0 }
 0x1b7   :  { %v812_v1 = vpop.f32.mrf.mxu2 }
 0x1b8   :  { %v978_v2 = vpack.c.bf16 %v950_v0, %v946_v60  ;;  %v813_v4 = vadd.f32 %v812_v1, %v784_v61  ;;  %v1964_v61 = vld [vmem:[%s2522_s7 + $0x80] sm:$0xff]  ;;  %v1975_v1 = vld [vmem:[%s2522_s7 + $0xd8] sm:$0xff] }
 0x1b9   :  { %v728_v5 = vpop.f32.mrf.mxu3  ;;  %v757_v6 = vpop.f32.mrf.mxu0  ;;  %1319 = vmatpush.bf16.msrb.mxu1 %v1964_v61  ;;  %1992 = vmatpush.bf16.msrb.mxu2 %v1975_v1 }
 0x1ba   :  { %v951_v9 = vmax.f32 %v813_v4, 0.0  ;;  %1262 = vmatmul.bf16.vlgmr.msrb.gmra.mxu3 %v978_v2  ;;  %v729_v13 = vadd.f32 %v728_v5, %v2378_v47 }
 0x1bb   :  { %v788_v19 = vpop.f32.mrf.mxu1 }
 0x1bc   :  { %v979_v10 = vpack.c.bf16 %v951_v9, %v947_v8  ;;  %v758_v18 = vadd.f32 %v757_v6, %v729_v13  ;;  %v789_v27 = vadd.f32 %v788_v19, %v2385_v52  ;;  %v1974_v6 = vld [vmem:[%s2522_s7 + $0xd0] sm:$0xff] }
 0x1bd   :  { %1341 = vmatpush.bf16.msra.mxu1 %v2399_v12  ;;  %1993 = vmatpush.bf16.msrb.mxu2 %v1974_v6 }
 0x1be   :  { %1291 = vmatmul.bf16.vlgmr.msrb.gmra.mxu0 %v979_v10  ;;  %v954_v63 = vmax.f32 %v758_v18, 0.0  ;;  %v1973_v10 = vld [vmem:[%s2522_s7 + $0xc8] sm:$0xff] }
 0x1bf   :  { %v815_v15 = vpop.f32.mrf.mxu2 }
 0x1c0   :  { %v816_v28 = vadd.f32 %v815_v15, %v787_v22 }
 0x1c1   :  { %v730_v16 = vpop.f32.mrf.mxu3  ;;  %v759_v17 = vpop.f32.mrf.mxu0  ;;  %1342 = vmatpush.bf16.msra.mxu1 %v1978_v26  ;;  %1994 = vmatpush.bf16.msrb.mxu2 %v1973_v10 }
 0x1c2   :  { %v731_v21 = vadd.f32 %v730_v16, %v2378_v47  ;;  %v955_v14 = vmax.f32 %v816_v28, 0.0 }
 0x1c4   :  { %v760_v24 = vadd.f32 %v759_v17, %v731_v21 }
 0x1c5   :  { %1343 = vmatpush.bf16.msra.mxu1 %v1977_v33 }
 0x1c6   :  { %v958_v29 = vmax.f32 %v760_v24, 0.0  ;;  %v1972_v24 = vld [vmem:[%s2522_s7 + $0xc0] sm:$0xff] }
 0x1c7   :  { %v817_v7 = vpop.f32.mrf.mxu2  ;;  %1995 = vmatpush.bf16.msrb.mxu2 %v1972_v24 }
 0x1c8   :  { %v818_v23 = vadd.f32 %v817_v7, %v789_v27  ;;  %v982_v38 = vpack.c.bf16 %v958_v29, %v954_v63  ;;  %v2449_v63 = vperm.slane %v2375_v43, 3 }
 0x1c9   :  { %v762_v45 = vpop.f32.mrf.mxu0  ;;  %1344 = vmatpush.bf16.msra.mxu1 %v1976_v41 }
 0x1ca   :  { %v959_v20 = vmax.f32 %v818_v23, 0.0  ;;  %v791_v30 = vpop.f32.mrf.mxu1  ;;  %1267 = vmatmul.bf16.gmra.mxu3 %v982_v38  ;;  %v2453_v23 = vperm.slane %v2375_v43, 2 }
 0x1cb   :  { %v792_v42 = vadd.f32 %v791_v30, %v2385_v52 }
 0x1cc   :  { %v983_v31 = vpack.c.bf16 %v959_v20, %v955_v14 }
 0x1cd   :  { %1345 = vmatpush.bf16.msra.mxu1 %v1975_v1 }
 0x1ce   :  { %1296 = vmatmul.bf16.gmra.mxu0 %v983_v31 }
 0x1cf   :  { %v733_v34 = vpop.f32.mrf.mxu3 }
 0x1d0   :  { %v820_v35 = vpop.f32.mrf.mxu2  ;;  %v734_v39 = vadd.f32 %v733_v34, %v2378_v47 }
 0x1d1   :  { %v764_v36 = vpop.f32.mrf.mxu0  ;;  %v821_v44 = vadd.f32 %v820_v35, %v792_v42  ;;  %1346 = vmatpush.bf16.msra.mxu1 %v1974_v6 }
 0x1d2   :  { %v793_v37 = vpop.f32.mrf.mxu1  ;;  %v763_v49 = vadd.f32 %v762_v45, %v734_v39 }
 0x1d3   :  { %v794_v46 = vadd.f32 %v793_v37, %v2385_v52  ;;  %v963_v57 = vmax.f32 %v821_v44, 0.0 }
 0x1d4   :  { %v962_v59 = vmax.f32 %v763_v49, 0.0 }
 0x1d5   :  { %1347 = vmatpush.bf16.msra.mxu1 %v1973_v10 }
 0x1d7   :  { %v735_v48 = vpop.f32.mrf.mxu3 }
 0x1d8   :  { %v736_v50 = vadd.f32 %v735_v48, %v2378_v47  ;;  %v822_v51 = vpop.f32.mrf.mxu2 }
 0x1d9   :  { %v823_v53 = vadd.f32 %v822_v51, %v794_v46  ;;  %v767_v54 = vpop.f32.mrf.mxu0  ;;  %1348 = vmatpush.bf16.msra.mxu1 %v1972_v24 }
 0x1da   :  { %v765_v55 = vadd.f32 %v764_v36, %v736_v50  ;;  %v796_v56 = vpop.f32.mrf.mxu1 }
 0x1db   :  { %v967_v58 = vmax.f32 %v823_v53, 0.0  ;;  %v797_v9 = vadd.f32 %v796_v56, %v2385_v52 }
 0x1dc   :  { %v966_v60 = vmax.f32 %v765_v55, 0.0 }
 0x1dd   :  { %v987_v62 = vpack.c.bf16 %v967_v58, %v963_v57 }
 0x1de   :  { %v986_v0 = vpack.c.bf16 %v966_v60, %v962_v59 }
 0x1df   :  { %1301 = vmatmul.bf16.gmra.mxu0 %v987_v62  ;;  %v738_v2 = vpop.f32.mrf.mxu3 }
 0x1e0   :  { %v825_v3 = vpop.f32.mrf.mxu2  ;;  %1272 = vmatmul.bf16.gmra.mxu3 %v986_v0  ;;  %v739_v8 = vadd.f32 %v738_v2, %v2378_v47 }
 0x1e1   :  { %v769_v4 = vpop.f32.mrf.mxu0  ;;  %v826_v11 = vadd.f32 %v825_v3, %v797_v9 }
 0x1e2   :  { %v798_v5 = vpop.f32.mrf.mxu1  ;;  %v768_v15 = vadd.f32 %v767_v54, %v739_v8 }
 0x1e3   :  { %v799_v12 = vadd.f32 %v798_v5, %v2385_v52  ;;  %v971_v25 = vmax.f32 %v826_v11, 0.0 }
 0x1e4   :  { %v970_v52 = vmax.f32 %v768_v15, 0.0 }
 0x1e7   :  { %v740_v13 = vpop.f32.mrf.mxu3 }
 0x1e8   :  { %v741_v16 = vadd.f32 %v740_v13, %v2378_v47  ;;  %v827_v17 = vpop.f32.mrf.mxu2 }
 0x1e9   :  { %v828_v18 = vadd.f32 %v827_v17, %v799_v12  ;;  %v868_v19 = vpop.f32.mrf.mxu0 }
 0x1ea   :  { %v770_v21 = vadd.f32 %v769_v4, %v741_v16  ;;  %v897_v22 = vpop.f32.mrf.mxu1 }
 0x1eb   :  { %v975_v26 = vmax.f32 %v828_v18, 0.0  ;;  %v898_v29 = vadd.f32 %v897_v22, %v2449_v63 }
 0x1ec   :  { %v974_v27 = vmax.f32 %v770_v21, 0.0 }
 0x1ed   :  { %v991_v47 = vpack.c.bf16 %v975_v26, %v971_v25 }
 0x1ee   :  { %v990_v28 = vpack.c.bf16 %v974_v27, %v970_v52 }
 0x1ef   :  { %1306 = vmatmul.bf16.gmra.mxu0 %v991_v47  ;;  %v839_v7 = vpop.f32.mrf.mxu3 }
 0x1f0   :  { %v926_v38 = vpop.f32.mrf.mxu2  ;;  %1277 = vmatmul.bf16.gmra.mxu3 %v990_v28  ;;  %v840_v30 = vadd.f32 %v839_v7, %v2453_v23 }
 0x1f1   :  { %v927_v45 = vadd.f32 %v926_v38, %v898_v29  ;;  %v870_v14 = vpop.f32.mrf.mxu0 }
 0x1f2   :  { %v899_v20 = vpop.f32.mrf.mxu1  ;;  %v869_v33 = vadd.f32 %v868_v19, %v840_v30 }
 0x1f3   :  { %v900_v31 = vadd.f32 %v899_v20, %v2449_v63  ;;  %v949_v40 = vmax.f32 %v927_v45, 0.0 }
 0x1f4   :  { %v948_v42 = vmax.f32 %v869_v33, 0.0 }
 0x1f7   :  { %v841_v32 = vpop.f32.mrf.mxu3 }
 0x1f8   :  { %v842_v34 = vadd.f32 %v841_v32, %v2453_v23  ;;  %v928_v35 = vpop.f32.mrf.mxu2 }
 0x1f9   :  { %v929_v36 = vadd.f32 %v928_v35, %v900_v31  ;;  %v873_v37 = vpop.f32.mrf.mxu0 }
 0x1fa   :  { %v871_v43 = vadd.f32 %v870_v14, %v842_v34  ;;  %v902_v39 = vpop.f32.mrf.mxu1 }
 0x1fb   :  { %v953_v41 = vmax.f32 %v929_v36, 0.0  ;;  %v903_v55 = vadd.f32 %v902_v39, %v2449_v63 }
 0x1fc   :  { %v952_v44 = vmax.f32 %v871_v43, 0.0 }
 0x1fd   :  { %v2458_v46 = vpack.c.bf16 %v953_v41, %v949_v40 }
 0x1fe   :  { %v980_v48 = vpack.c.bf16 %v952_v44, %v948_v42 }
 0x1ff   :  { %v844_v49 = vpop.f32.mrf.mxu3 }
 0x200   :  { %v931_v50 = vpop.f32.mrf.mxu2  ;;  %1320 = vmatmul.bf16.vlgmr.msrb.gmra.mxu1 %v980_v48  ;;  %v845_v54 = vadd.f32 %v844_v49, %v2453_v23 }
 0x201   :  { %v875_v51 = vpop.f32.mrf.mxu0  ;;  %v932_v56 = vadd.f32 %v931_v50, %v903_v55 }
 0x202   :  { %v904_v53 = vpop.f32.mrf.mxu1  ;;  %v874_v59 = vadd.f32 %v873_v37, %v845_v54 }
 0x203   :  { %v905_v57 = vadd.f32 %v904_v53, %v2449_v63  ;;  %v957_v2 = vmax.f32 %v932_v56, 0.0 }
 0x204   :  { %v956_v5 = vmax.f32 %v874_v59, 0.0  ;;  %v2488_v59 = vld [vmem:[%s2523_s8] ss:$0 sm:$0xff]  ;;  %s2075_s8 = smov [#allocation5]  }
 0x205   :  { %s1391_s18 = sshll.u32 %s2075_s8, 4  ;;  %s1392_s18 = int_to_ptr.vmem [resolvable:$true] %s1391_s18 }
 0x207   :  { %v846_v58 = vpop.f32.mrf.mxu3 }
 0x208   :  { %v847_v60 = vadd.f32 %v846_v58, %v2453_v23  ;;  %v933_v61 = vpop.f32.mrf.mxu2 }
 0x209   :  { %v934_v62 = vadd.f32 %v933_v61, %v905_v57  ;;  %v878_v4 = vpop.f32.mrf.mxu0 }
 0x20a   :  { %v876_v0 = vadd.f32 %v875_v51, %v847_v60  ;;  %v907_v1 = vpop.f32.mrf.mxu1 }
 0x20b   :  { %v961_v3 = vmax.f32 %v934_v62, 0.0  ;;  %v908_v15 = vadd.f32 %v907_v1, %v2449_v63 }
 0x20c   :  { %v960_v6 = vmax.f32 %v876_v0, 0.0 }
 0x20d   :  { %v985_v8 = vpack.c.bf16 %v961_v3, %v957_v2 }
 0x20e   :  { %v984_v9 = vpack.c.bf16 %v960_v6, %v956_v5 }
 0x20f   :  { %1354 = vmatmul.bf16.vlgmr.msrb.gmra.mxu2 %v985_v8  ;;  %v849_v10 = vpop.f32.mrf.mxu3 }
 0x210   :  { %v936_v11 = vpop.f32.mrf.mxu2  ;;  %1325 = vmatmul.bf16.gmra.mxu1 %v984_v9  ;;  %v850_v13 = vadd.f32 %v849_v10, %v2453_v23 }
 0x211   :  { %v880_v16 = vpop.f32.mrf.mxu0  ;;  %v937_v17 = vadd.f32 %v936_v11, %v908_v15 }
 0x212   :  { %v909_v12 = vpop.f32.mrf.mxu1  ;;  %v879_v21 = vadd.f32 %v878_v4, %v850_v13 }
 0x213   :  { %v910_v18 = vadd.f32 %v909_v12, %v2449_v63  ;;  %v965_v27 = vmax.f32 %v937_v17, 0.0 }
 0x214   :  { %v964_v28 = vmax.f32 %v879_v21, 0.0 }
 0x217   :  { %v851_v19 = vpop.f32.mrf.mxu3 }
 0x218   :  { %v852_v22 = vadd.f32 %v851_v19, %v2453_v23  ;;  %v938_v24 = vpop.f32.mrf.mxu2 }
 0x219   :  { %v939_v25 = vadd.f32 %v938_v24, %v910_v18  ;;  %v883_v45 = vpop.f32.mrf.mxu0 }
 0x21a   :  { %v881_v26 = vadd.f32 %v880_v16, %v852_v22  ;;  %v912_v52 = vpop.f32.mrf.mxu1 }
 0x21b   :  { %v969_v47 = vmax.f32 %v939_v25, 0.0  ;;  %v913_v32 = vadd.f32 %v912_v52, %v2449_v63 }
 0x21c   :  { %v968_v29 = vmax.f32 %v881_v26, 0.0 }
 0x21d   :  { %v989_v7 = vpack.c.bf16 %v969_v47, %v965_v27 }
 0x21e   :  { %v988_v38 = vpack.c.bf16 %v968_v29, %v964_v28 }
 0x21f   :  { %1359 = vmatmul.bf16.gmra.mxu2 %v989_v7  ;;  %v854_v14 = vpop.f32.mrf.mxu3 }
 0x220   :  { %v941_v20 = vpop.f32.mrf.mxu2  ;;  %1330 = vmatmul.bf16.gmra.mxu1 %v988_v38  ;;  %v855_v30 = vadd.f32 %v854_v14, %v2453_v23 }
 0x221   :  { %v942_v33 = vadd.f32 %v941_v20, %v913_v32  ;;  %v885_v39 = vpop.f32.mrf.mxu0 }
 0x222   :  { %v914_v31 = vpop.f32.mrf.mxu1  ;;  %v884_v36 = vadd.f32 %v883_v45, %v855_v30 }
 0x223   :  { %v915_v34 = vadd.f32 %v914_v31, %v2449_v63  ;;  %v973_v42 = vmax.f32 %v942_v33, 0.0 }
 0x224   :  { %v972_v48 = vmax.f32 %v884_v36, 0.0 }
 0x227   :  { %v856_v35 = vpop.f32.mrf.mxu3 }
 0x228   :  { %v857_v37 = vadd.f32 %v856_v35, %v2453_v23  ;;  %v943_v43 = vpop.f32.mrf.mxu2 }
 0x229   :  { %v944_v40 = vadd.f32 %v943_v43, %v915_v34 }
 0x22a   :  { %v886_v41 = vadd.f32 %v885_v39, %v857_v37 }
 0x22b   :  { %v977_v44 = vmax.f32 %v944_v40, 0.0 }
 0x22c   :  { %v976_v49 = vmax.f32 %v886_v41, 0.0 }
 0x22d   :  { %v993_v50 = vpack.c.bf16 %v977_v44, %v973_v42 }
 0x22e   :  { %v992_v51 = vpack.c.bf16 %v976_v49, %v972_v48 }
 0x22f   :  { %1364 = vmatmul.bf16.gmra.mxu2 %v993_v50 }
 0x230   :  { %1335 = vmatmul.bf16.gmra.mxu1 %v992_v51 }
 0x23b   :  { %v2475_v63 = vpop.f32.mrf.mxu0 }
 0x23d   :  { %v2473_v53 = vpop.f32.mrf.mxu3 }
 0x23e   :  { %v1264_v43 = vadd.f32 %v2488_v59, %v2473_v53 }
 0x240   :  { %1349 = vmatmul.bf16.vlgmr.msra.gmra.mxu1 %v2458_v46  ;;  %v1293_v42 = vadd.f32 %v2475_v63, %v1264_v43 }
 0x243   :  { %v2479_v23 = vpop.f32.mrf.mxu0 }
 0x245   :  { %v2477_v54 = vpop.f32.mrf.mxu3 }
 0x24b   :  { %v1297_v57 = vpop.f32.mrf.mxu0 }
 0x24d   :  { %v1268_v56 = vpop.f32.mrf.mxu3 }
 0x24e   :  { %v1269_v60 = vadd.f32 %v2488_v59, %v1268_v56  ;;  %v1266_v56 = vadd.f32 %v2488_v59, %v2477_v54 }
 0x250   :  { %v1298_v0 = vadd.f32 %v1297_v57, %v1269_v60  ;;  %v1295_v53 = vadd.f32 %v2479_v23, %v1266_v56 }
 0x253   :  { %v1299_v62 = vpop.f32.mrf.mxu0 }
 0x255   :  { %v1270_v46 = vpop.f32.mrf.mxu3 }
 0x256   :  { %v1271_v4 = vadd.f32 %v2488_v59, %v1270_v46 }
 0x258   :  { %v1300_v8 = vadd.f32 %v1299_v62, %v1271_v4 }
 0x25c   :  { %v1302_v9 = vpop.f32.mrf.mxu0 }
 0x263   :  { %v1273_v2 = vpop.f32.mrf.mxu3 }
 0x264   :  { %v1274_v13 = vadd.f32 %v2488_v59, %v1273_v2  ;;  %v1304_v21 = vpop.f32.mrf.mxu0 }
 0x266   :  { %v1303_v18 = vadd.f32 %v1302_v9, %v1274_v13 }
 0x26b   :  { %v1275_v16 = vpop.f32.mrf.mxu3 }
 0x26c   :  { %v1276_v25 = vadd.f32 %v2488_v59, %v1275_v16  ;;  %v1307_v14 = vpop.f32.mrf.mxu0 }
 0x26e   :  { %v1305_v47 = vadd.f32 %v1304_v21, %v1276_v25 }
 0x273   :  { %v1278_v27 = vpop.f32.mrf.mxu3 }
 0x274   :  { %v1279_v38 = vadd.f32 %v2488_v59, %v1278_v27  ;;  %v1309_v39 = vpop.f32.mrf.mxu0 }
 0x276   :  { %v1308_v30 = vadd.f32 %v1307_v14, %v1279_v38 }
 0x27b   :  { %v1280_v31 = vpop.f32.mrf.mxu3 }
 0x27c   :  { %v1281_v35 = vadd.f32 %v2488_v59, %v1280_v31 }
 0x27d   :  { %v2481_v55 = vpop.f32.mrf.mxu1 }
 0x27e   :  { %v1310_v40 = vadd.f32 %v1309_v39, %v1281_v35  ;;  %v1322_v50 = vadd.f32 %v2481_v55, %v1293_v42 }
 0x285   :  { %v2483_v58 = vpop.f32.mrf.mxu1 }
 0x286   :  { %v1324_v60 = vadd.f32 %v2483_v58, %v1295_v53 }
 0x28d   :  { %v1326_v61 = vpop.f32.mrf.mxu1 }
 0x28e   :  { %v1327_v1 = vadd.f32 %v1326_v61, %v1298_v0 }
 0x292   :  { %v1355_v3 = vpop.f32.mrf.mxu2 }
 0x293   :  { %v1356_v5 = vadd.f32 %v1355_v3, %v1327_v1 }
 0x295   :  { %2004 = vtanh.f32 %v1356_v5  ;;  %v1328_v6 = vpop.f32.mrf.mxu1 }
 0x296   :  { %v1329_v10 = vadd.f32 %v1328_v6, %v1300_v8 }
 0x29a   :  { %v1357_v11 = vpop.f32.mrf.mxu2 }
 0x29b   :  { %v2005_v12 = vpop.eup %2004  ;;  %v1358_v15 = vadd.f32 %v1357_v11, %v1329_v10 }
 0x29c   :  { %1381 = vst.msk [vmem:[#allocation5 + $0x10] sm:$0xff] %vm1378_vm1, %v2005_v12 }
 0x29d   :  { %2006 = vtanh.f32 %v1358_v15  ;;  %v1331_v17 = vpop.f32.mrf.mxu1 }
 0x29e   :  { %v1332_v19 = vadd.f32 %v1331_v17, %v1303_v18 }
 0x2a2   :  { %v1360_v22 = vpop.f32.mrf.mxu2 }
 0x2a3   :  { %v2007_v24 = vpop.eup %2006  ;;  %v1361_v26 = vadd.f32 %v1360_v22, %v1332_v19 }
 0x2a4   :  { %1382 = vst.msk [vmem:[#allocation5 + $0x18] sm:$0xff] %vm1378_vm1, %v2007_v24 }
 0x2a5   :  { %2008 = vtanh.f32 %v1361_v26  ;;  %v1333_v52 = vpop.f32.mrf.mxu1 }
 0x2a6   :  { %v1334_v28 = vadd.f32 %v1333_v52, %v1305_v47 }
 0x2aa   :  { %v1362_v29 = vpop.f32.mrf.mxu2 }
 0x2ab   :  { %v2009_v7 = vpop.eup %2008  ;;  %v1363_v45 = vadd.f32 %v1362_v29, %v1334_v28 }
 0x2ac   :  { %1383 = vst.msk [vmem:[#allocation5 + $0x20] sm:$0xff] %vm1378_vm1, %v2009_v7 }
 0x2ad   :  { %2010 = vtanh.f32 %v1363_v45  ;;  %v1336_v20 = vpop.f32.mrf.mxu1 }
 0x2ae   :  { %v1337_v32 = vadd.f32 %v1336_v20, %v1308_v30 }
 0x2b2   :  { %v1365_v33 = vpop.f32.mrf.mxu2 }
 0x2b3   :  { %v2011_v34 = vpop.eup %2010  ;;  %v1366_v36 = vadd.f32 %v1365_v33, %v1337_v32 }
 0x2b4   :  { %1384 = vst.msk [vmem:[#allocation5 + $0x28] sm:$0xff] %vm1378_vm1, %v2011_v34 }
 0x2b5   :  { %2012 = vtanh.f32 %v1366_v36  ;;  %v1338_v37 = vpop.f32.mrf.mxu1 }
 0x2b6   :  { %v1339_v41 = vadd.f32 %v1338_v37, %v1310_v40 }
 0x2ba   :  { %v1367_v44 = vpop.f32.mrf.mxu2 }
 0x2bb   :  { %v2013_v48 = vpop.eup %2012  ;;  %v1368_v49 = vadd.f32 %v1367_v44, %v1339_v41 }
 0x2bc   :  { %1385 = vst.msk [vmem:[#allocation5 + $0x30] sm:$0xff] %vm1378_vm1, %v2013_v48 }
 0x2bd   :  { %2014 = vtanh.f32 %v1368_v49  ;;  %v1350_v51 = vpop.f32.mrf.mxu1 }
 0x2be   :  { %v1351_v57 = vadd.f32 %v1350_v51, %v1322_v50 }
 0x2c0   :  { %2016 = vtanh.f32 %v1351_v57 }
 0x2c3   :  { %v2015_v46 = vpop.eup %2014 }
 0x2c4   :  { %1386 = vst.msk [vmem:[#allocation5 + $0x38] sm:$0xff] %vm1378_vm1, %v2015_v46 }
 0x2c5   :  { %v1352_v63 = vpop.f32.mrf.mxu1 }
 0x2c6   :  { %v2017_v61 = vpop.eup %2016  ;;  %v1353_v62 = vadd.f32 %v1352_v63, %v1324_v60 }
 0x2c7   :  { %1379 = vst.msk [vmem:[#allocation5] sm:$0xff] %vm1378_vm1, %v2017_v61 }
 0x2c8   :  { %2018 = vtanh.f32 %v1353_v62 }
 0x2ce   :  { %v2019_v54 = vpop.eup %2018 }
 0x2cf   :  { %1380 = vst.msk [vmem:[#allocation5 + $0x8] sm:$0xff] %vm1378_vm1, %v2019_v54 }
 0x2d0   :  { %1399 = dma.vmem_to_hbm [thread:$0]  %s1392_s18, 1024, %s1394_s5, [#allocation4], %s2076_s21, %s2076_s21, %s2077_s22  }
 0x2d1   :  { %2070 = dma.done.wait [#allocation4], 1024  }
 0x2d2   :  { %2071 = vsyncadd [#allocation4], 4294966272 }
 0x2d3   :  { %1404 = vsyncpa [#allocation3], 1 }
 0x2d4   :  { %1405 = vsyncpa [#allocation4], 1 }

</bundles_post_ra>
